<compile_context>
chip_gen: v5e
topology: v5e:2x2
jax: 0.10.0
libtpu: 0.0.40
codegen_flags: <defaults>
</compile_context>

<pallas_src>
import functools

import jax
import jax.numpy as jnp
from jax.experimental import pallas as pl
from jax.experimental.pallas import tpu as pltpu


def _round_up(x, m):
    return ((x + m - 1) // m) * m


def _linear_kernel_fused_k(x_ref, w_ref, b_ref, o_ref):
    """Grid = (M tiles, N tiles); full K in one tile -> no accumulator needed."""
    acc = jnp.dot(x_ref[...], w_ref[...], preferred_element_type=jnp.float32)
    o_ref[...] = (acc + b_ref[...]).astype(o_ref.dtype)


def _linear_kernel_tiled_k(x_ref, w_ref, b_ref, o_ref, acc_ref):
    """Grid = (M tiles, N tiles, K tiles). K (reduction) is the innermost axis."""
    k = pl.program_id(2)

    @pl.when(k == 0)
    def _():
        acc_ref[...] = jnp.zeros_like(acc_ref)

    acc_ref[...] += jnp.dot(x_ref[...], w_ref[...],
                            preferred_element_type=jnp.float32)

    @pl.when(k == pl.num_programs(2) - 1)
    def _():
        o_ref[...] = (acc_ref[...] + b_ref[...]).astype(o_ref.dtype)


@functools.partial(jax.jit, static_argnames=("tm", "tn", "tk", "compute_dtype"))
def sparse_input_linear(x, weight, bias, *, tm=256, tn=256, tk=512,
                        compute_dtype=None):
    """x: (B, N, K) f32; weight: (K, out_dim); bias: (out_dim,).

    compute_dtype: optionally jnp.bfloat16 to run the matmul in bf16
    (accumulation and bias add stay f32).
    """
    B, N, K = x.shape
    out_dim = weight.shape[1]
    M = B * N

    # ---- choose effective tiles, padding only where actually needed ----
    # Row (sublane) alignment: 8 for f32, 16 for bf16 packing.
    row_align = 16 if compute_dtype == jnp.bfloat16 else 8
    tm_eff = min(tm, _round_up(M, row_align))
    M_pad = _round_up(M, tm_eff)

    # Output columns (lane dim): multiple of 128 -> unmasked, lane-dense stores.
    tn_eff = min(tn, _round_up(out_dim, 128))
    N_pad = _round_up(out_dim, tn_eff)

    # Reduction dim: single full-K tile when it fits (no (8,128) constraint for
    # full-extent blocks), otherwise 128-aligned chunks with a K grid axis.
    single_k = K <= tk
    if single_k:
        tk_eff, K_pad = K, K
    else:
        tk_eff = _round_up(tk, 128)
        K_pad = _round_up(K, tk_eff)

    x2d = x.reshape(M, K)
    if compute_dtype is not None:
        x2d = x2d.astype(compute_dtype)
        weight = weight.astype(compute_dtype)

    if (M_pad, K_pad) != (M, K):
        x2d = jnp.pad(x2d, ((0, M_pad - M), (0, K_pad - K)))
    if (K_pad, N_pad) != (K, out_dim):
        weight = jnp.pad(weight, ((0, K_pad - K), (0, N_pad - out_dim)))
    bias2d = bias.reshape(1, out_dim)
    if N_pad != out_dim:
        bias2d = jnp.pad(bias2d, ((0, 0), (0, N_pad - out_dim)))
    bias2d = bias2d.astype(jnp.float32)

    # VMEM budget: double-buffered inputs/outputs + accumulator, with margin,
    # capped at 48 MiB so it is safe on v7x's 64 MiB physical VMEM.
    elt = 2 if compute_dtype == jnp.bfloat16 else 4
    tile_bytes = (elt * (2 * tm_eff * tk_eff + 2 * tk_eff * tn_eff)
                  + 4 * (2 * tn_eff + 2 * tm_eff * tn_eff + tm_eff * tn_eff))
    vmem_limit = min(max(tile_bytes + (4 << 20), 32 << 20), 48 << 20)

    if single_k:
        grid = (M_pad // tm_eff, N_pad // tn_eff)
        grid_spec = pltpu.PrefetchScalarGridSpec(
            num_scalar_prefetch=0,
            grid=grid,
            in_specs=[
                pl.BlockSpec((tm_eff, tk_eff), lambda i, j: (i, 0)),   # x tile
                pl.BlockSpec((tk_eff, tn_eff), lambda i, j: (0, j)),   # weight tile
                pl.BlockSpec((1, tn_eff), lambda i, j: (0, j)),        # bias tile
            ],
            out_specs=pl.BlockSpec((tm_eff, tn_eff), lambda i, j: (i, j)),
        )
        kernel = _linear_kernel_fused_k
        dim_sem = ("parallel", "parallel")
    else:
        grid = (M_pad // tm_eff, N_pad // tn_eff, K_pad // tk_eff)
        grid_spec = pltpu.PrefetchScalarGridSpec(
            num_scalar_prefetch=0,
            grid=grid,
            in_specs=[
                pl.BlockSpec((tm_eff, tk_eff), lambda i, j, k: (i, k)),  # x tile
                pl.BlockSpec((tk_eff, tn_eff), lambda i, j, k: (k, j)),  # weight tile
                pl.BlockSpec((1, tn_eff), lambda i, j, k: (0, j)),       # bias tile
            ],
            out_specs=pl.BlockSpec((tm_eff, tn_eff), lambda i, j, k: (i, j)),
            scratch_shapes=[pltpu.VMEM((tm_eff, tn_eff), jnp.float32)],
        )
        kernel = _linear_kernel_tiled_k
        dim_sem = ("parallel", "parallel", "arbitrary")

    out2d = pl.pallas_call(
        kernel,
        out_shape=jax.ShapeDtypeStruct((M_pad, N_pad), x.dtype),
        grid_spec=grid_spec,
        compiler_params=pltpu.CompilerParams(
            dimension_semantics=dim_sem,
            vmem_limit_bytes=vmem_limit,
        ),
    )(x2d, weight, bias2d)

    if (M_pad, N_pad) != (M, out_dim):
        out2d = out2d[:M, :out_dim]
    return out2d.reshape(B, N, out_dim)


def init_params(key, inp_dim, out_dim):
    # Matches reset_parameters(): uniform(-stdv, stdv), stdv = 1/sqrt(out_dim)
    stdv = 1.0 / jnp.sqrt(jnp.float32(out_dim))
    kw, kb = jax.random.split(key)
    weight = jax.random.uniform(kw, (inp_dim, out_dim), jnp.float32, -stdv, stdv)
    bias = jax.random.uniform(kb, (out_dim,), jnp.float32, -stdv, stdv)
    return weight, bias


def _check(B, N, inp_dim, out_dim, key, **kwargs):
    k_x, k_p = jax.random.split(key)
    x = jax.random.normal(k_x, (B, N, inp_dim), dtype=jnp.float32)
    weight, bias = init_params(k_p, inp_dim, out_dim)
    out = jax.block_until_ready(sparse_input_linear(x, weight, bias, **kwargs))
    ref = (x.reshape(B * N, inp_dim) @ weight + bias).reshape(B, N, out_dim)
    assert out.shape == (B, N, out_dim)
    assert jnp.allclose(out, ref, atol=1e-4, rtol=1e-4), (
        f"mismatch: max abs err {jnp.max(jnp.abs(out - ref))}")


if __name__ == "__main__":
    key = jax.random.PRNGKey(0)
    k1, k2, k3 = jax.random.split(key, 3)

    # Toy case matching the module spec: out_dim=64 is padded to a lane-dense
    # 128-wide tile inside the wrapper; x itself needs no padding. Uses the
    # fused-K (no accumulator) kernel.
    _check(B=2, N=8, inp_dim=32, out_dim=64, key=k1)

    # Exercise row padding (M=39 -> 40) and out_dim padding (200 -> 256).
    _check(B=3, N=13, inp_dim=96, out_dim=200, key=k2)

    # Exercise the K-reduction grid axis + accumulator (3 k-steps).
    _check(B=2, N=20, inp_dim=384, out_dim=192, key=k3, tk=128)

    print("KERNEL_OK")
</pallas_src>

<mosaic_0001>
module attributes {stable_mosaic.version = 11 : i64} {
  func.func @_linear_kernel_fused_k(%arg0: i32, %arg1: i32, %arg2: memref<16x32xf32, #tpu.memory_space<vmem>>, %arg3: memref<32x128xf32, #tpu.memory_space<vmem>>, %arg4: memref<1x128xf32, #tpu.memory_space<vmem>>, %arg5: memref<16x128xf32, #tpu.memory_space<vmem>>) attributes {dimension_semantics = [#tpu.dimension_semantics<parallel>, #tpu.dimension_semantics<parallel>], iteration_bounds = array<i64: 1, 1>, scalar_prefetch = 0 : i64, scratch_operands = 0 : i64, tpu.core_type = #tpu.core_type<tc>, window_params = [{transform_indices = @transform_0, window_bounds = array<i64: 16, 32>}, {transform_indices = @transform_1, window_bounds = array<i64: 32, 128>}, {transform_indices = @transform_2, window_bounds = array<i64: 1, 128>}, {transform_indices = @transform_3, window_bounds = array<i64: 16, 128>}]} {
    %c0 = arith.constant 0 : index
    %c0_0 = arith.constant 0 : index
    %0 = vector.load %arg2[%c0, %c0_0] : memref<16x32xf32, #tpu.memory_space<vmem>>, vector<16x32xf32>
    %c0_1 = arith.constant 0 : index
    %c0_2 = arith.constant 0 : index
    %1 = vector.load %arg3[%c0_1, %c0_2] : memref<32x128xf32, #tpu.memory_space<vmem>>, vector<32x128xf32>
    %cst = arith.constant dense<0.000000e+00> : vector<16x128xf32>
    %2 = tpu.matmul %0, %1, %cst {dimension_numbers = #tpu.dot_dimension_numbers<[1], [0], [0], [1], [0, 0, 1, 1], [], []>} : vector<16x32xf32>, vector<32x128xf32>, vector<16x128xf32> -> vector<16x128xf32>
    %c0_3 = arith.constant 0 : index
    %c0_4 = arith.constant 0 : index
    %3 = vector.load %arg4[%c0_3, %c0_4] : memref<1x128xf32, #tpu.memory_space<vmem>>, vector<1x128xf32>
    %4 = vector.broadcast %3 : vector<1x128xf32> to vector<16x128xf32>
    %5 = arith.addf %2, %4 : vector<16x128xf32>
    %c0_5 = arith.constant 0 : index
    %c0_6 = arith.constant 0 : index
    %6 = vector.load %arg5[%c0_5, %c0_6] : memref<16x128xf32, #tpu.memory_space<vmem>>, vector<16x128xf32>
    tpu.vector_store %arg5[%c0_5, %c0_6], %5 {strides = array<i32>} : memref<16x128xf32, #tpu.memory_space<vmem>>, vector<16x128xf32>,
    return
  }
  func.func @transform_0(%arg0: i32, %arg1: i32) -> (i32, i32) {
    %c0_i32 = arith.constant 0 : i32
    %c0_i32_0 = arith.constant 0 : i32
    return %arg0, %c0_i32 : i32, i32
  }
  func.func @transform_1(%arg0: i32, %arg1: i32) -> (i32, i32) {
    %c0_i32 = arith.constant 0 : i32
    %c0_i32_0 = arith.constant 0 : i32
    return %c0_i32, %arg1 : i32, i32
  }
  func.func @transform_2(%arg0: i32, %arg1: i32) -> (i32, i32) {
    %c0_i32 = arith.constant 0 : i32
    %c0_i32_0 = arith.constant 0 : i32
    return %c0_i32, %arg1 : i32, i32
  }
  func.func @transform_3(%arg0: i32, %arg1: i32) -> (i32, i32) {
    %c0_i32 = arith.constant 0 : i32
    return %arg0, %arg1 : i32, i32
  }
}

</mosaic_0001>

<bundles_post_ra>
// kernel: sparse_input_linear.1
= control target key start
LH: loop header
LB: loop body
LE: loop exit
PB: predicated region body
PF: predicated region fallthrough
CT: control target
= control target key end

     0   :  { %vm24_vm0 = vcmask 261120   ;;  %s114_s1 = inlined_call_operand.vmem [shape: f32[32,128], index: 1, kind: input, shape index: {}]   ;;  %s115_s2 = inlined_call_operand.vmem [shape: f32[1,128], index: 2, kind: input, shape index: {}]   ;;  %s116_s0 = inlined_call_operand.vmem [shape: f32[16,32], index: 0, kind: input, shape index: {}]   ;;  %s117_s3 = inlined_call_operand.vmem [shape: f32[16,128], index: 3, kind: output, shape index: {}]  }
   0x1   :  { %v19_v0 = vld [vmem:[%s114_s1 + $0x18] sm:$0xff]  ;;  %v18_v1 = vld [vmem:[%s114_s1 + $0x10] sm:$0xff]  ;;  %v17_v2 = vld [vmem:[%s114_s1 + $0x8] sm:$0xff] }
   0x2   :  { %43 = vmatpush.msra.mxu0 %v19_v0  ;;  %62 = vmatpush.msra.mxu1 %v19_v0  ;;  %v16_v3 = vld [vmem:[%s114_s1] sm:$0xff]  ;;  %v15_v5 = vld [vmem:[%s116_s0 + $0x8] sm:$0xff] }
   0x3   :  { %v14_v4 = vld [vmem:[%s116_s0] sm:$0xff] }
   0x4   :  { %44 = vmatpush.msra.mxu0 %v18_v1  ;;  %63 = vmatpush.msra.mxu1 %v18_v1  ;;  %v66_v6 = vld [vmem:[%s115_s2] ss:$0 sm:$0xff] }
   0x6   :  { %45 = vmatpush.msra.mxu0 %v17_v2  ;;  %64 = vmatpush.msra.mxu1 %v17_v2 }
   0x8   :  { %46 = vmatpush.msra.mxu0 %v16_v3  ;;  %65 = vmatpush.msra.mxu1 %v16_v3 }
   0x9   :  { %60 = vmatmul.msk.f32.vlgmr.msra.gmra.mxu0 %vm24_vm0, %v14_v4  ;;  %61 = vmatmul.msk.f32.vlgmr.msra.gmra.mxu1 %vm24_vm0, %v15_v5 }
  0x86   :  { %v48_v7 = vpop.f32.mrf.mxu0  ;;  %v51_v8 = vpop.f32.mrf.mxu1 }
  0x87   :  { %v49_v9 = vadd.f32 %v66_v6, %v48_v7  ;;  %v52_v10 = vadd.f32 %v66_v6, %v51_v8 }
  0x89   :  { %54 = vst [vmem:[%s117_s3] sm:$0xff] %v49_v9 }
  0x8a   :  { %55 = vst [vmem:[%s117_s3 + $0x8] sm:$0xff] %v52_v10 }

</bundles_post_ra>
